<compile_context>
chip_gen: v6e
topology: v6e:2x2x1
jax: 0.10.0
libtpu: 0.0.40
codegen_flags: <defaults>
</compile_context>

<pallas_src>
import functools

import jax
import jax.numpy as jnp
from jax.experimental import pallas as pl
from jax.experimental.pallas import tpu as pltpu

HID1, HID2, HID3 = 128, 128, 64
MIN_TILE_B = 256    # multiple of 256 (v6e/v7x MXU) and 128 (v5e MXU)
MAX_TILE_B = 1024   # keeps double-buffered working set ~2 MiB, well under VMEM


def _mlp_kernel(x_ref, w1_ref, b1_ref, w2_ref, b2_ref, w3_ref, b3_ref,
                w4_ref, b4_ref, o_ref):
    # One batch tile per grid step. Weights/biases use a constant index_map so
    # they are DMA'd once and stay VMEM-resident across the batch pipeline.
    # All rows are independent, so a partial (ragged) final tile is safe: any
    # garbage rows never mix with valid rows and their stores are masked.
    h = jnp.dot(x_ref[...], w1_ref[...],
                preferred_element_type=jnp.float32) + b1_ref[...]
    h = jnp.maximum(h, 0.0)
    h = jnp.dot(h, w2_ref[...],
                preferred_element_type=jnp.float32) + b2_ref[...]
    h = jnp.maximum(h, 0.0)
    h = jnp.dot(h, w3_ref[...],
                preferred_element_type=jnp.float32) + b3_ref[...]
    h = jnp.maximum(h, 0.0)
    h = jnp.dot(h, w4_ref[...],
                preferred_element_type=jnp.float32) + b4_ref[...]
    o_ref[...] = h.astype(o_ref.dtype)


def _resident_spec(shape):
    # Full-array block, same block every grid step -> fetched once, VMEM-resident.
    return pl.BlockSpec(shape, lambda i: (0, 0))


def _pick_tile_b(batch):
    # Big tiles to amortize per-step overhead, but aim for >=2 grid steps so the
    # batch axis shards across both TensorCores on v7x. Always a multiple of 256.
    half = pl.cdiv(batch, 2)
    tile = pl.cdiv(half, MIN_TILE_B) * MIN_TILE_B
    return max(MIN_TILE_B, min(MAX_TILE_B, tile))


@functools.partial(jax.jit, static_argnames=("model",))
def matcha_forward(params, x, model="online"):
    """Pallas-backed equivalent of MatchaNet.forward(x, model)."""
    if model not in ("online", "target"):
        raise ValueError("model must be 'online' or 'target'")
    w1, b1, w2, b2, w3, b3, w4, b4 = params[model]
    B, in_dim = x.shape
    out_dim = w4.shape[1]

    x = x.astype(jnp.float32)  # mirrors input.to(torch.float); no-op if f32

    tile_b = _pick_tile_b(B)
    grid = (pl.cdiv(B, tile_b),)

    flops = 2 * B * (in_dim * HID1 + HID1 * HID2 + HID2 * HID3 + HID3 * out_dim)
    bytes_accessed = 4 * (
        B * in_dim + B * out_dim
        + in_dim * HID1 + HID1 + HID1 * HID2 + HID2
        + HID2 * HID3 + HID3 + HID3 * out_dim + out_dim)

    out = pl.pallas_call(
        _mlp_kernel,
        out_shape=jax.ShapeDtypeStruct((B, out_dim), jnp.float32),
        grid=grid,
        in_specs=[
            pl.BlockSpec((tile_b, in_dim), lambda i: (i, 0)),
            _resident_spec(w1.shape), _resident_spec(b1.shape),
            _resident_spec(w2.shape), _resident_spec(b2.shape),
            _resident_spec(w3.shape), _resident_spec(b3.shape),
            _resident_spec(w4.shape), _resident_spec(b4.shape),
        ],
        out_specs=pl.BlockSpec((tile_b, out_dim), lambda i: (i, 0)),
        compiler_params=pltpu.CompilerParams(
            dimension_semantics=("parallel",),
            vmem_limit_bytes=32 * 1024 * 1024),
        cost_estimate=pl.CostEstimate(
            flops=flops, transcendentals=0, bytes_accessed=bytes_accessed),
    )(x, w1, b1, w2, b2, w3, b3, w4, b4)

    return out


def init_matcha_params(key, input_dim, output_dim):
    """One-time parameter prep: shapes match the nn.Linear layers, but weights
    are stored pre-transposed as (in, out) so the forward path has zero
    per-call layout/cast work."""
    dims = [(input_dim, HID1), (HID1, HID2), (HID2, HID3), (HID3, output_dim)]
    keys = jax.random.split(key, len(dims))
    online = []
    for k, (fan_in, fan_out) in zip(keys, dims):
        kw, kb = jax.random.split(k)
        bound = 1.0 / jnp.sqrt(fan_in)
        w = jax.random.uniform(kw, (fan_in, fan_out), jnp.float32, -bound, bound)
        b = jax.random.uniform(kb, (1, fan_out), jnp.float32, -bound, bound)
        online += [w, b]
    online = tuple(online)
    # target = copy.deepcopy(online): identical values (frozen — no grads here).
    target = tuple(jnp.array(p) for p in online)
    return {"online": online, "target": target}


def _reference_forward(params, x, model):
    # Pure-JAX f32 reference (HIGHEST precision) matching torch nn.Linear math.
    w1, b1, w2, b2, w3, b3, w4, b4 = params[model]

    def mm(h, w):
        return jnp.dot(h, w, precision=jax.lax.Precision.HIGHEST)

    h = x.astype(jnp.float32)
    h = jnp.maximum(mm(h, w1) + b1, 0.0)
    h = jnp.maximum(mm(h, w2) + b2, 0.0)
    h = jnp.maximum(mm(h, w3) + b3, 0.0)
    return mm(h, w4) + b4


if __name__ == "__main__":
    key = jax.random.PRNGKey(0)
    kp, kx = jax.random.split(key)

    batch, input_dim, output_dim = 2, 16, 8
    params = init_matcha_params(kp, input_dim, output_dim)
    x = jax.random.normal(kx, (batch, input_dim), dtype=jnp.float32)

    out_online = jax.block_until_ready(matcha_forward(params, x, model="online"))
    out_target = jax.block_until_ready(matcha_forward(params, x, model="target"))

    ref_online = _reference_forward(params, x, "online")
    ref_target = _reference_forward(params, x, "target")

    assert out_online.shape == (batch, output_dim)
    assert out_target.shape == (batch, output_dim)
    assert jnp.allclose(out_online, ref_online, atol=1e-2, rtol=1e-2)
    assert jnp.allclose(out_target, ref_target, atol=1e-2, rtol=1e-2)
    # online and target share identical (deep-copied) weights at init.
    assert jnp.allclose(out_online, out_target)

    # Also exercise a batch that spans multiple grid steps with a ragged tail.
    big_b = 2 * MIN_TILE_B + 37
    xb = jax.random.normal(kx, (big_b, input_dim), dtype=jnp.float32)
    out_big = jax.block_until_ready(matcha_forward(params, xb, model="online"))
    assert out_big.shape == (big_b, output_dim)
    assert jnp.allclose(out_big, _reference_forward(params, xb, "online"),
                        atol=1e-2, rtol=1e-2)

    print("KERNEL_OK")
</pallas_src>

<mosaic_0001>
module attributes {stable_mosaic.version = 11 : i64} {
  func.func @_mlp_kernel(%arg0: i32, %arg1: memref<256x16xf32, #tpu.memory_space<vmem>>, %arg2: memref<16x128xf32, #tpu.memory_space<vmem>>, %arg3: memref<1x128xf32, #tpu.memory_space<vmem>>, %arg4: memref<128x128xf32, #tpu.memory_space<vmem>>, %arg5: memref<1x128xf32, #tpu.memory_space<vmem>>, %arg6: memref<128x64xf32, #tpu.memory_space<vmem>>, %arg7: memref<1x64xf32, #tpu.memory_space<vmem>>, %arg8: memref<64x8xf32, #tpu.memory_space<vmem>>, %arg9: memref<1x8xf32, #tpu.memory_space<vmem>>, %arg10: memref<256x8xf32, #tpu.memory_space<vmem>>) attributes {dimension_semantics = [#tpu.dimension_semantics<parallel>], iteration_bounds = array<i64: 1>, scalar_prefetch = 0 : i64, scratch_operands = 0 : i64, tpu.core_type = #tpu.core_type<tc>, window_params = [{transform_indices = @transform_0, window_bounds = array<i64: 256, 16>}, {pipeline_mode = #tpu.pipeline_mode<synchronous>, transform_indices = @transform_1, window_bounds = array<i64: 16, 128>}, {pipeline_mode = #tpu.pipeline_mode<synchronous>, transform_indices = @transform_2, window_bounds = array<i64: 1, 128>}, {pipeline_mode = #tpu.pipeline_mode<synchronous>, transform_indices = @transform_3, window_bounds = array<i64: 128, 128>}, {pipeline_mode = #tpu.pipeline_mode<synchronous>, transform_indices = @transform_4, window_bounds = array<i64: 1, 128>}, {pipeline_mode = #tpu.pipeline_mode<synchronous>, transform_indices = @transform_5, window_bounds = array<i64: 128, 64>}, {pipeline_mode = #tpu.pipeline_mode<synchronous>, transform_indices = @transform_6, window_bounds = array<i64: 1, 64>}, {pipeline_mode = #tpu.pipeline_mode<synchronous>, transform_indices = @transform_7, window_bounds = array<i64: 64, 8>}, {pipeline_mode = #tpu.pipeline_mode<synchronous>, transform_indices = @transform_8, window_bounds = array<i64: 1, 8>}, {transform_indices = @transform_9, window_bounds = array<i64: 256, 8>}]} {
    %c0 = arith.constant 0 : index
    %c0_0 = arith.constant 0 : index
    %0 = vector.load %arg1[%c0, %c0_0] : memref<256x16xf32, #tpu.memory_space<vmem>>, vector<256x16xf32>
    %c0_1 = arith.constant 0 : index
    %c0_2 = arith.constant 0 : index
    %1 = vector.load %arg2[%c0_1, %c0_2] : memref<16x128xf32, #tpu.memory_space<vmem>>, vector<16x128xf32>
    %cst = arith.constant dense<0.000000e+00> : vector<256x128xf32>
    %2 = tpu.matmul %0, %1, %cst {dimension_numbers = #tpu.dot_dimension_numbers<[1], [0], [0], [1], [0, 0, 1, 1], [], []>} : vector<256x16xf32>, vector<16x128xf32>, vector<256x128xf32> -> vector<256x128xf32>
    %c0_3 = arith.constant 0 : index
    %c0_4 = arith.constant 0 : index
    %3 = vector.load %arg3[%c0_3, %c0_4] : memref<1x128xf32, #tpu.memory_space<vmem>>, vector<1x128xf32>
    %4 = vector.broadcast %3 : vector<1x128xf32> to vector<256x128xf32>
    %5 = arith.addf %2, %4 : vector<256x128xf32>
    %cst_5 = arith.constant 0.000000e+00 : f32
    %6 = vector.broadcast %cst_5 : f32 to vector<256x128xf32>
    %7 = arith.maximumf %5, %6 : vector<256x128xf32>
    %c0_6 = arith.constant 0 : index
    %c0_7 = arith.constant 0 : index
    %8 = vector.load %arg4[%c0_6, %c0_7] : memref<128x128xf32, #tpu.memory_space<vmem>>, vector<128x128xf32>
    %cst_8 = arith.constant dense<0.000000e+00> : vector<256x128xf32>
    %9 = tpu.matmul %7, %8, %cst_8 {dimension_numbers = #tpu.dot_dimension_numbers<[1], [0], [0], [1], [0, 0, 1, 1], [], []>} : vector<256x128xf32>, vector<128x128xf32>, vector<256x128xf32> -> vector<256x128xf32>
    %c0_9 = arith.constant 0 : index
    %c0_10 = arith.constant 0 : index
    %10 = vector.load %arg5[%c0_9, %c0_10] : memref<1x128xf32, #tpu.memory_space<vmem>>, vector<1x128xf32>
    %11 = vector.broadcast %10 : vector<1x128xf32> to vector<256x128xf32>
    %12 = arith.addf %9, %11 : vector<256x128xf32>
    %cst_11 = arith.constant 0.000000e+00 : f32
    %13 = vector.broadcast %cst_11 : f32 to vector<256x128xf32>
    %14 = arith.maximumf %12, %13 : vector<256x128xf32>
    %c0_12 = arith.constant 0 : index
    %c0_13 = arith.constant 0 : index
    %15 = vector.load %arg6[%c0_12, %c0_13] : memref<128x64xf32, #tpu.memory_space<vmem>>, vector<128x64xf32>
    %cst_14 = arith.constant dense<0.000000e+00> : vector<256x64xf32>
    %16 = tpu.matmul %14, %15, %cst_14 {dimension_numbers = #tpu.dot_dimension_numbers<[1], [0], [0], [1], [0, 0, 1, 1], [], []>} : vector<256x128xf32>, vector<128x64xf32>, vector<256x64xf32> -> vector<256x64xf32>
    %c0_15 = arith.constant 0 : index
    %c0_16 = arith.constant 0 : index
    %17 = vector.load %arg7[%c0_15, %c0_16] : memref<1x64xf32, #tpu.memory_space<vmem>>, vector<1x64xf32>
    %18 = vector.broadcast %17 : vector<1x64xf32> to vector<256x64xf32>
    %19 = arith.addf %16, %18 : vector<256x64xf32>
    %cst_17 = arith.constant 0.000000e+00 : f32
    %20 = vector.broadcast %cst_17 : f32 to vector<256x64xf32>
    %21 = arith.maximumf %19, %20 : vector<256x64xf32>
    %c0_18 = arith.constant 0 : index
    %c0_19 = arith.constant 0 : index
    %22 = vector.load %arg8[%c0_18, %c0_19] : memref<64x8xf32, #tpu.memory_space<vmem>>, vector<64x8xf32>
    %cst_20 = arith.constant dense<0.000000e+00> : vector<256x8xf32>
    %23 = tpu.matmul %21, %22, %cst_20 {dimension_numbers = #tpu.dot_dimension_numbers<[1], [0], [0], [1], [0, 0, 1, 1], [], []>} : vector<256x64xf32>, vector<64x8xf32>, vector<256x8xf32> -> vector<256x8xf32>
    %c0_21 = arith.constant 0 : index
    %c0_22 = arith.constant 0 : index
    %24 = vector.load %arg9[%c0_21, %c0_22] : memref<1x8xf32, #tpu.memory_space<vmem>>, vector<1x8xf32>
    %25 = vector.broadcast %24 : vector<1x8xf32> to vector<256x8xf32>
    %26 = arith.addf %23, %25 : vector<256x8xf32>
    %c0_23 = arith.constant 0 : index
    %c0_24 = arith.constant 0 : index
    %27 = vector.load %arg10[%c0_23, %c0_24] : memref<256x8xf32, #tpu.memory_space<vmem>>, vector<256x8xf32>
    tpu.vector_store %arg10[%c0_23, %c0_24], %26 {strides = array<i32>} : memref<256x8xf32, #tpu.memory_space<vmem>>, vector<256x8xf32>,
    return
  }
  func.func @transform_0(%arg0: i32) -> (i32, i32) {
    %c0_i32 = arith.constant 0 : i32
    %c0_i32_0 = arith.constant 0 : i32
    return %arg0, %c0_i32 : i32, i32
  }
  func.func @transform_1(%arg0: i32) -> (i32, i32) {
    %c0_i32 = arith.constant 0 : i32
    %c0_i32_0 = arith.constant 0 : i32
    %c0_i32_1 = arith.constant 0 : i32
    return %c0_i32, %c0_i32_0 : i32, i32
  }
  func.func @transform_2(%arg0: i32) -> (i32, i32) {
    %c0_i32 = arith.constant 0 : i32
    %c0_i32_0 = arith.constant 0 : i32
    %c0_i32_1 = arith.constant 0 : i32
    return %c0_i32, %c0_i32_0 : i32, i32
  }
  func.func @transform_3(%arg0: i32) -> (i32, i32) {
    %c0_i32 = arith.constant 0 : i32
    %c0_i32_0 = arith.constant 0 : i32
    %c0_i32_1 = arith.constant 0 : i32
    return %c0_i32, %c0_i32_0 : i32, i32
  }
  func.func @transform_4(%arg0: i32) -> (i32, i32) {
    %c0_i32 = arith.constant 0 : i32
    %c0_i32_0 = arith.constant 0 : i32
    %c0_i32_1 = arith.constant 0 : i32
    return %c0_i32, %c0_i32_0 : i32, i32
  }
  func.func @transform_5(%arg0: i32) -> (i32, i32) {
    %c0_i32 = arith.constant 0 : i32
    %c0_i32_0 = arith.constant 0 : i32
    %c0_i32_1 = arith.constant 0 : i32
    return %c0_i32, %c0_i32_0 : i32, i32
  }
  func.func @transform_6(%arg0: i32) -> (i32, i32) {
    %c0_i32 = arith.constant 0 : i32
    %c0_i32_0 = arith.constant 0 : i32
    %c0_i32_1 = arith.constant 0 : i32
    return %c0_i32, %c0_i32_0 : i32, i32
  }
  func.func @transform_7(%arg0: i32) -> (i32, i32) {
    %c0_i32 = arith.constant 0 : i32
    %c0_i32_0 = arith.constant 0 : i32
    %c0_i32_1 = arith.constant 0 : i32
    return %c0_i32, %c0_i32_0 : i32, i32
  }
  func.func @transform_8(%arg0: i32) -> (i32, i32) {
    %c0_i32 = arith.constant 0 : i32
    %c0_i32_0 = arith.constant 0 : i32
    %c0_i32_1 = arith.constant 0 : i32
    return %c0_i32, %c0_i32_0 : i32, i32
  }
  func.func @transform_9(%arg0: i32) -> (i32, i32) {
    %c0_i32 = arith.constant 0 : i32
    %c0_i32_0 = arith.constant 0 : i32
    return %arg0, %c0_i32 : i32, i32
  }
}

</mosaic_0001>

<bundles_post_ra>
// kernel: matcha_forward.1
= control target key start
LH: loop header
LB: loop body
LE: loop exit
PB: predicated region body
PF: predicated region fallthrough
CT: control target
= control target key end

     0   :  { %14 = vsyncpa [#allocation3], 0  ;;  %vm74_vm0 = vcmask 130048   ;;  %vm1003_vm1 = vcmask 523264   ;;  %vm1325_vm2 = vcmask 64512   ;;  %s2451_s0 = inlined_call_operand.vmem [shape: f32[2,16], index: 0, kind: input, shape index: {}]   ;;  %s2452_s1 = inlined_call_operand.vmem [shape: f32[16,128], index: 1, kind: input, shape index: {}]   ;;  %s2453_s2 = inlined_call_operand.vmem [shape: f32[1,128], index: 2, kind: input, shape index: {}]   ;;  %s2454_s3 = inlined_call_operand.vmem [shape: f32[128,128], index: 3, kind: input, shape index: {}]   ;;  %s2455_s4 = inlined_call_operand.vmem [shape: f32[1,128], index: 4, kind: input, shape index: {}]   ;;  %s2456_s5 = inlined_call_operand.vmem [shape: f32[128,64], index: 5, kind: input, shape index: {}]   ;;  %s2457_s6 = inlined_call_operand.vmem [shape: f32[1,64], index: 6, kind: input, shape index: {}]   ;;  %s2458_s7 = inlined_call_operand.vmem [shape: f32[64,8], index: 7, kind: input, shape index: {}]   ;;  %s2459_s8 = inlined_call_operand.vmem [shape: f32[1,8], index: 8, kind: input, shape index: {}]   ;;  %s2460_s9 = inlined_call_operand.hbm [shape: f32[2,8], index: 9, kind: output, shape index: {}]  }
   0x1   :  { %v66_v0 = vld [vmem:[%s2452_s1 + $0x8] sm:$0xff]  ;;  %v65_v1 = vld [vmem:[%s2452_s1] sm:$0xff]  ;;  %v35_v4 = vld [vmem:[%s2451_s0 + $0x10] sm:$0xff] }
   0x2   :  { %1612 = vmatprep.subr.mxu0 %v66_v0  ;;  %v33_v2 = vld [vmem:[%s2451_s0] sm:$0xff]  ;;  %v34_v3 = vld [vmem:[%s2451_s0 + $0x8] sm:$0xff]  ;;  %v36_v5 = vld [vmem:[%s2451_s0 + $0x18] sm:$0xff] }
   0x3   :  { %1613 = vmatpush3.msra.mxu0 %v66_v0  ;;  %1616 = vmatprep.mubr.msk.f32.mxu0 %vm74_vm0, %v33_v2  ;;  %v37_v6 = vld [vmem:[%s2451_s0 + $0x20] sm:$0xff]  ;;  %v38_v7 = vld [vmem:[%s2451_s0 + $0x28] sm:$0xff]  ;;  %v39_v8 = vld [vmem:[%s2451_s0 + $0x30] sm:$0xff] }
   0x4   :  { %1614 = vmatprep.subr.mxu0 %v65_v1  ;;  %v443_v9 = vld [vmem:[%s2454_s3 + $0x78] sm:$0xff]  ;;  %v442_v10 = vld [vmem:[%s2454_s3 + $0x70] sm:$0xff]  ;;  %v441_v11 = vld [vmem:[%s2454_s3 + $0x68] sm:$0xff] }
   0x5   :  { %1615 = vmatpush3.msra.mxu0 %v65_v1  ;;  %1664 = vmatprep.subr.mxu1 %v443_v9  ;;  %v40_v12 = vld [vmem:[%s2451_s0 + $0x38] sm:$0xff]  ;;  %v41_v13 = vld [vmem:[%s2451_s0 + $0x40] sm:$0xff]  ;;  %v42_v16 = vld [vmem:[%s2451_s0 + $0x48] sm:$0xff] }
   0x6   :  { %1617 = vmatmul.mubr.msk.f32.vlgmr.msra.gmra.mxu0 %vm74_vm0, %v34_v3  ;;  %1665 = vmatpush3.msra.mxu1 %v443_v9  ;;  %v440_v14 = vld [vmem:[%s2454_s3 + $0x60] sm:$0xff]  ;;  %v439_v15 = vld [vmem:[%s2454_s3 + $0x58] sm:$0xff]  ;;  %v43_v17 = vld [vmem:[%s2451_s0 + $0x50] sm:$0xff] }
   0x7   :  { %1619 = vmatprep.mubr.msk.f32.mxu0 %vm74_vm0, %v35_v4  ;;  %1666 = vmatprep.subr.mxu1 %v442_v10  ;;  %v438_v18 = vld [vmem:[%s2454_s3 + $0x50] sm:$0xff]  ;;  %v437_v19 = vld [vmem:[%s2454_s3 + $0x48] sm:$0xff]  ;;  %v44_v20 = vld [vmem:[%s2451_s0 + $0x58] sm:$0xff] }
   0x8   :  { %1667 = vmatpush3.msra.mxu1 %v442_v10  ;;  %v45_v21 = vld [vmem:[%s2451_s0 + $0x60] sm:$0xff]  ;;  %v435_v23 = vld [vmem:[%s2454_s3 + $0x38] sm:$0xff]  ;;  %v46_v24 = vld [vmem:[%s2451_s0 + $0x68] sm:$0xff] }
   0x9   :  { %1668 = vmatprep.subr.mxu1 %v441_v11  ;;  %v436_v22 = vld [vmem:[%s2454_s3 + $0x40] sm:$0xff]  ;;  %v47_v25 = vld [vmem:[%s2451_s0 + $0x70] sm:$0xff]  ;;  %v433_v27 = vld [vmem:[%s2454_s3 + $0x28] sm:$0xff] }
   0xa   :  { %1620 = vmatmul.mubr.msk.f32.gmra.mxu0 %vm74_vm0, %v36_v5  ;;  %1669 = vmatpush3.msra.mxu1 %v441_v11  ;;  %v434_v26 = vld [vmem:[%s2454_s3 + $0x30] sm:$0xff]  ;;  %v48_v28 = vld [vmem:[%s2451_s0 + $0x78] sm:$0xff]  ;;  %v49_v29 = vld [vmem:[%s2451_s0 + $0x80] sm:$0xff] }
   0xb   :  { %1622 = vmatprep.mubr.msk.f32.mxu0 %vm74_vm0, %v37_v6  ;;  %1670 = vmatprep.subr.mxu1 %v440_v14  ;;  %v432_v30 = vld [vmem:[%s2454_s3 + $0x20] sm:$0xff]  ;;  %v50_v31 = vld [vmem:[%s2451_s0 + $0x88] sm:$0xff]  ;;  %v51_v32 = vld [vmem:[%s2451_s0 + $0x90] sm:$0xff] }
   0xc   :  { %1671 = vmatpush3.msra.mxu1 %v440_v14  ;;  %v52_v33 = vld [vmem:[%s2451_s0 + $0x98] sm:$0xff]  ;;  %v53_v34 = vld [vmem:[%s2451_s0 + $0xa0] sm:$0xff]  ;;  %v54_v35 = vld [vmem:[%s2451_s0 + $0xa8] sm:$0xff] }
   0xd   :  { %1672 = vmatprep.subr.mxu1 %v439_v15  ;;  %v55_v36 = vld [vmem:[%s2451_s0 + $0xb0] sm:$0xff]  ;;  %v56_v37 = vld [vmem:[%s2451_s0 + $0xb8] sm:$0xff]  ;;  %v57_v38 = vld [vmem:[%s2451_s0 + $0xc0] sm:$0xff] }
   0xe   :  { %1623 = vmatmul.mubr.msk.f32.gmra.mxu0 %vm74_vm0, %v38_v7  ;;  %1673 = vmatpush3.msra.mxu1 %v439_v15  ;;  %v58_v39 = vld [vmem:[%s2451_s0 + $0xc8] sm:$0xff]  ;;  %v59_v40 = vld [vmem:[%s2451_s0 + $0xd0] sm:$0xff]  ;;  %v60_v41 = vld [vmem:[%s2451_s0 + $0xd8] sm:$0xff] }
   0xf   :  { %1625 = vmatprep.mubr.msk.f32.mxu0 %vm74_vm0, %v39_v8  ;;  %1674 = vmatprep.subr.mxu1 %v438_v18  ;;  %v61_v42 = vld [vmem:[%s2451_s0 + $0xe0] sm:$0xff]  ;;  %v62_v43 = vld [vmem:[%s2451_s0 + $0xe8] sm:$0xff]  ;;  %v63_v44 = vld [vmem:[%s2451_s0 + $0xf0] sm:$0xff] }
  0x10   :  { %1675 = vmatpush3.msra.mxu1 %v438_v18  ;;  %v64_v45 = vld [vmem:[%s2451_s0 + $0xf8] sm:$0xff]  ;;  %v430_v47 = vld [vmem:[%s2454_s3 + $0x10] sm:$0xff]  ;;  %v429_v48 = vld [vmem:[%s2454_s3 + $0x8] sm:$0xff] }
  0x11   :  { %1676 = vmatprep.subr.mxu1 %v437_v19  ;;  %v431_v46 = vld [vmem:[%s2454_s3 + $0x18] sm:$0xff]  ;;  %v428_v49 = vld [vmem:[%s2454_s3] sm:$0xff]  ;;  %v722_v51 = vld [vmem:[%s2456_s5 + $0x70] sm:$0xff] }
  0x12   :  { %1626 = vmatmul.mubr.msk.f32.gmra.mxu0 %vm74_vm0, %v40_v12  ;;  %1677 = vmatpush3.msra.mxu1 %v437_v19  ;;  %v723_v50 = vld [vmem:[%s2456_s5 + $0x78] sm:$0xff]  ;;  %v721_v52 = vld [vmem:[%s2456_s5 + $0x68] sm:$0xff]  ;;  %v720_v53 = vld [vmem:[%s2456_s5 + $0x60] sm:$0xff] }
  0x13   :  { %1628 = vmatprep.mubr.msk.f32.mxu0 %vm74_vm0, %v41_v13  ;;  %1678 = vmatprep.subr.mxu1 %v436_v22  ;;  %v719_v54 = vld [vmem:[%s2456_s5 + $0x58] sm:$0xff]  ;;  %v718_v55 = vld [vmem:[%s2456_s5 + $0x50] sm:$0xff]  ;;  %v717_v56 = vld [vmem:[%s2456_s5 + $0x48] sm:$0xff] }
  0x14   :  { %1679 = vmatpush3.msra.mxu1 %v436_v22  ;;  %1744 = vmatprep.subr.mxu0 %v723_v50  ;;  %v716_v57 = vld [vmem:[%s2456_s5 + $0x40] sm:$0xff]  ;;  %v715_v58 = vld [vmem:[%s2456_s5 + $0x38] sm:$0xff]  ;;  %v714_v59 = vld [vmem:[%s2456_s5 + $0x30] sm:$0xff] }
  0x15   :  { %1680 = vmatprep.subr.mxu1 %v435_v23  ;;  %1745 = vmatpush3.msra.mxu0 %v723_v50  ;;  %v713_v60 = vld [vmem:[%s2456_s5 + $0x28] sm:$0xff]  ;;  %v712_v61 = vld [vmem:[%s2456_s5 + $0x20] sm:$0xff]  ;;  %v711_v62 = vld [vmem:[%s2456_s5 + $0x18] sm:$0xff] }
  0x16   :  { %1629 = vmatmul.mubr.msk.f32.gmra.mxu0 %vm74_vm0, %v42_v16  ;;  %1681 = vmatpush3.msra.mxu1 %v435_v23  ;;  %v710_v63 = vld [vmem:[%s2456_s5 + $0x10] sm:$0xff]  ;;  %v709_v0 = vld [vmem:[%s2456_s5 + $0x8] sm:$0xff]  ;;  %v2212_v1 = vld [vmem:[%s2453_s2] ss:$0 sm:$0xff] }
  0x17   :  { %1631 = vmatprep.mubr.msk.f32.mxu0 %vm74_vm0, %v43_v17  ;;  %1682 = vmatprep.subr.mxu1 %v434_v26 }
  0x18   :  { %1683 = vmatpush3.msra.mxu1 %v434_v26  ;;  %1746 = vmatprep.subr.mxu0 %v722_v51 }
  0x19   :  { %1684 = vmatprep.subr.mxu1 %v433_v27  ;;  %1747 = vmatpush3.msra.mxu0 %v722_v51 }
  0x1a   :  { %1632 = vmatmul.mubr.msk.f32.gmra.mxu0 %vm74_vm0, %v44_v20  ;;  %1685 = vmatpush3.msra.mxu1 %v433_v27 }
  0x1b   :  { %1634 = vmatprep.mubr.msk.f32.mxu0 %vm74_vm0, %v45_v21  ;;  %1686 = vmatprep.subr.mxu1 %v432_v30 }
  0x1c   :  { %1687 = vmatpush3.msra.mxu1 %v432_v30  ;;  %1748 = vmatprep.subr.mxu0 %v721_v52 }
  0x1d   :  { %1688 = vmatprep.subr.mxu1 %v431_v46  ;;  %1749 = vmatpush3.msra.mxu0 %v721_v52 }
  0x1e   :  { %1635 = vmatmul.mubr.msk.f32.gmra.mxu0 %vm74_vm0, %v46_v24  ;;  %1689 = vmatpush3.msra.mxu1 %v431_v46 }
  0x1f   :  { %1637 = vmatprep.mubr.msk.f32.mxu0 %vm74_vm0, %v47_v25  ;;  %1690 = vmatprep.subr.mxu1 %v430_v47 }
  0x20   :  { %1691 = vmatpush3.msra.mxu1 %v430_v47  ;;  %1750 = vmatprep.subr.mxu0 %v720_v53 }
  0x21   :  { %1692 = vmatprep.subr.mxu1 %v429_v48  ;;  %1751 = vmatpush3.msra.mxu0 %v720_v53 }
  0x22   :  { %1638 = vmatmul.mubr.msk.f32.gmra.mxu0 %vm74_vm0, %v48_v28  ;;  %1693 = vmatpush3.msra.mxu1 %v429_v48 }
  0x23   :  { %1640 = vmatprep.mubr.msk.f32.mxu0 %vm74_vm0, %v49_v29  ;;  %1694 = vmatprep.subr.mxu1 %v428_v49 }
  0x24   :  { %1695 = vmatpush3.msra.mxu1 %v428_v49  ;;  %1752 = vmatprep.subr.mxu0 %v719_v54 }
  0x25   :  { %1753 = vmatpush3.msra.mxu0 %v719_v54 }
  0x26   :  { %1641 = vmatmul.mubr.msk.f32.gmra.mxu0 %vm74_vm0, %v50_v31  ;;  %1754 = vmatprep.subr.mxu0 %v718_v55 }
  0x27   :  { %1643 = vmatprep.mubr.msk.f32.mxu0 %vm74_vm0, %v51_v32  ;;  %1755 = vmatpush3.msra.mxu0 %v718_v55 }
  0x28   :  { %1756 = vmatprep.subr.mxu0 %v717_v56 }
  0x29   :  { %1757 = vmatpush3.msra.mxu0 %v717_v56 }
  0x2a   :  { %1644 = vmatmul.mubr.msk.f32.gmra.mxu0 %vm74_vm0, %v52_v33  ;;  %1758 = vmatprep.subr.mxu0 %v716_v57 }
  0x2b   :  { %1646 = vmatprep.mubr.msk.f32.mxu0 %vm74_vm0, %v53_v34  ;;  %1759 = vmatpush3.msra.mxu0 %v716_v57 }
  0x2c   :  { %1760 = vmatprep.subr.mxu0 %v715_v58 }
  0x2d   :  { %1761 = vmatpush3.msra.mxu0 %v715_v58 }
  0x2e   :  { %1647 = vmatmul.mubr.msk.f32.gmra.mxu0 %vm74_vm0, %v54_v35  ;;  %1762 = vmatprep.subr.mxu0 %v714_v59 }
  0x2f   :  { %1649 = vmatprep.mubr.msk.f32.mxu0 %vm74_vm0, %v55_v36  ;;  %1763 = vmatpush3.msra.mxu0 %v714_v59 }
  0x30   :  { %1764 = vmatprep.subr.mxu0 %v713_v60 }
  0x31   :  { %1765 = vmatpush3.msra.mxu0 %v713_v60 }
  0x32   :  { %1650 = vmatmul.mubr.msk.f32.gmra.mxu0 %vm74_vm0, %v56_v37  ;;  %1766 = vmatprep.subr.mxu0 %v712_v61 }
  0x33   :  { %1652 = vmatprep.mubr.msk.f32.mxu0 %vm74_vm0, %v57_v38  ;;  %1767 = vmatpush3.msra.mxu0 %v712_v61 }
  0x34   :  { %1768 = vmatprep.subr.mxu0 %v711_v62 }
  0x35   :  { %1769 = vmatpush3.msra.mxu0 %v711_v62 }
  0x36   :  { %1653 = vmatmul.mubr.msk.f32.gmra.mxu0 %vm74_vm0, %v58_v39  ;;  %1770 = vmatprep.subr.mxu0 %v710_v63 }
  0x37   :  { %1655 = vmatprep.mubr.msk.f32.mxu0 %vm74_vm0, %v59_v40  ;;  %1771 = vmatpush3.msra.mxu0 %v710_v63 }
  0x38   :  { %1772 = vmatprep.subr.mxu0 %v709_v0 }
  0x39   :  { %1773 = vmatpush3.msra.mxu0 %v709_v0 }
  0x3a   :  { %1656 = vmatmul.mubr.msk.f32.gmra.mxu0 %vm74_vm0, %v60_v41 }
  0x3b   :  { %1658 = vmatprep.mubr.msk.f32.mxu0 %vm74_vm0, %v61_v42 }
  0x3e   :  { %1659 = vmatmul.mubr.msk.f32.gmra.mxu0 %vm74_vm0, %v62_v43 }
  0x3f   :  { %1661 = vmatprep.mubr.msk.f32.mxu0 %vm74_vm0, %v63_v44 }
  0x42   :  { %1662 = vmatmul.mubr.msk.f32.gmra.mxu0 %vm74_vm0, %v64_v45 }
  0xc6   :  { %v1618_v2 = vpop.f32.mrf.mxu0 }
  0xc7   :  { %v243_v3 = vadd.f32 %v1618_v2, %v2212_v1 }
  0xc8   :  { %v237_v4 = vpop.f32.mrf.mxu0 }
  0xc9   :  { %v238_v5 = vadd.f32 %v2212_v1, %v237_v4  ;;  %v397_v8 = vmax.f32 %v243_v3, 0.0 }
  0xca   :  { %v1621_v6 = vpop.f32.mrf.mxu0 }
  0xcb   :  { %v396_v7 = vmax.f32 %v238_v5, 0.0  ;;  %v253_v9 = vadd.f32 %v1621_v6, %v2212_v1 }
  0xcc   :  { %v247_v10 = vpop.f32.mrf.mxu0 }
  0xcd   :  { %v248_v11 = vadd.f32 %v2212_v1, %v247_v10  ;;  %1696 = vmatprep.mubr.f32.mxu1 %v396_v7  ;;  %v399_v14 = vmax.f32 %v253_v9, 0.0 }
  0xce   :  { %v1624_v12 = vpop.f32.mrf.mxu0  ;;  %1697 = vmatmul.mubr.f32.vlgmr.msra.gmra.mxu1 %v397_v8 }
  0xcf   :  { %v398_v13 = vmax.f32 %v248_v11, 0.0  ;;  %v263_v15 = vadd.f32 %v1624_v12, %v2212_v1 }
  0xd0   :  { %v257_v16 = vpop.f32.mrf.mxu0 }
  0xd1   :  { %v258_v17 = vadd.f32 %v2212_v1, %v257_v16  ;;  %1699 = vmatprep.mubr.f32.mxu1 %v398_v13  ;;  %v401_v20 = vmax.f32 %v263_v15, 0.0 }
  0xd2   :  { %v1627_v18 = vpop.f32.mrf.mxu0  ;;  %1700 = vmatmul.mubr.f32.gmra.mxu1 %v399_v14 }
  0xd3   :  { %v400_v19 = vmax.f32 %v258_v17, 0.0  ;;  %v273_v21 = vadd.f32 %v1627_v18, %v2212_v1 }
  0xd4   :  { %v267_v22 = vpop.f32.mrf.mxu0 }
  0xd5   :  { %v268_v23 = vadd.f32 %v2212_v1, %v267_v22  ;;  %1702 = vmatprep.mubr.f32.mxu1 %v400_v19  ;;  %v403_v26 = vmax.f32 %v273_v21, 0.0 }
  0xd6   :  { %v1630_v24 = vpop.f32.mrf.mxu0  ;;  %1703 = vmatmul.mubr.f32.gmra.mxu1 %v401_v20 }
  0xd7   :  { %v402_v25 = vmax.f32 %v268_v23, 0.0  ;;  %v283_v27 = vadd.f32 %v1630_v24, %v2212_v1 }
  0xd8   :  { %v277_v28 = vpop.f32.mrf.mxu0 }
  0xd9   :  { %v278_v29 = vadd.f32 %v2212_v1, %v277_v28  ;;  %1705 = vmatprep.mubr.f32.mxu1 %v402_v25  ;;  %v405_v32 = vmax.f32 %v283_v27, 0.0 }
  0xda   :  { %v1633_v30 = vpop.f32.mrf.mxu0  ;;  %1706 = vmatmul.mubr.f32.gmra.mxu1 %v403_v26 }
  0xdb   :  { %v404_v31 = vmax.f32 %v278_v29, 0.0  ;;  %v293_v33 = vadd.f32 %v1633_v30, %v2212_v1 }
  0xdc   :  { %v287_v34 = vpop.f32.mrf.mxu0 }
  0xdd   :  { %v288_v35 = vadd.f32 %v2212_v1, %v287_v34  ;;  %1708 = vmatprep.mubr.f32.mxu1 %v404_v31  ;;  %v407_v38 = vmax.f32 %v293_v33, 0.0 }
  0xde   :  { %v1636_v36 = vpop.f32.mrf.mxu0  ;;  %1709 = vmatmul.mubr.f32.gmra.mxu1 %v405_v32 }
  0xdf   :  { %v406_v37 = vmax.f32 %v288_v35, 0.0  ;;  %v303_v39 = vadd.f32 %v1636_v36, %v2212_v1  ;;  %v708_v35 = vld [vmem:[%s2456_s5] sm:$0xff]  ;;  %v995_v36 = vld [vmem:[%s2458_s7 + $0x38] sm:$0xff] }
  0xe0   :  { %v297_v40 = vpop.f32.mrf.mxu0  ;;  %1774 = vmatprep.subr.mxu0 %v708_v35  ;;  %1888 = vmatprep.subr.mxu1 %v995_v36 }
  0xe1   :  { %v298_v41 = vadd.f32 %v2212_v1, %v297_v40  ;;  %1711 = vmatprep.mubr.f32.mxu1 %v406_v37  ;;  %v409_v44 = vmax.f32 %v303_v39, 0.0  ;;  %1775 = vmatpush3.msra.mxu0 %v708_v35  ;;  %v993_v37 = vld [vmem:[%s2458_s7 + $0x28] sm:$0xff]  ;;  %v991_v39 = vld [vmem:[%s2458_s7 + $0x18] sm:$0xff]  ;;  %v990_v40 = vld [vmem:[%s2458_s7 + $0x10] sm:$0xff] }
  0xe2   :  { %v1639_v42 = vpop.f32.mrf.mxu0  ;;  %1712 = vmatmul.mubr.f32.gmra.mxu1 %v407_v38  ;;  %1824 = vmatprep.subr.mxu0 %v995_v36  ;;  %v992_v38 = vld [vmem:[%s2458_s7 + $0x20] sm:$0xff] }
  0xe3   :  { %v408_v43 = vmax.f32 %v298_v41, 0.0  ;;  %v313_v45 = vadd.f32 %v1639_v42, %v2212_v1  ;;  %1896 = vmatpush3.msra.mxu1 %v995_v36  ;;  %v2270_v41 = vld [vmem:[%s2455_s4] ss:$0 sm:$0xff] }
  0xe4   :  { %v307_v46 = vpop.f32.mrf.mxu0 }
  0xe5   :  { %v308_v47 = vadd.f32 %v2212_v1, %v307_v46  ;;  %1714 = vmatprep.mubr.f32.mxu1 %v408_v43  ;;  %v411_v50 = vmax.f32 %v313_v45, 0.0 }
  0xe6   :  { %v1642_v48 = vpop.f32.mrf.mxu0  ;;  %1715 = vmatmul.mubr.f32.gmra.mxu1 %v409_v44 }
  0xe7   :  { %v410_v49 = vmax.f32 %v308_v47, 0.0  ;;  %v323_v51 = vadd.f32 %v1642_v48, %v2212_v1 }
  0xe8   :  { %v317_v52 = vpop.f32.mrf.mxu0 }
  0xe9   :  { %v318_v53 = vadd.f32 %v2212_v1, %v317_v52  ;;  %1717 = vmatprep.mubr.f32.mxu1 %v410_v49  ;;  %v413_v56 = vmax.f32 %v323_v51, 0.0 }
  0xea   :  { %v1645_v54 = vpop.f32.mrf.mxu0  ;;  %1718 = vmatmul.mubr.f32.gmra.mxu1 %v411_v50 }
  0xeb   :  { %v412_v55 = vmax.f32 %v318_v53, 0.0  ;;  %v333_v57 = vadd.f32 %v1645_v54, %v2212_v1 }
  0xec   :  { %v327_v58 = vpop.f32.mrf.mxu0 }
  0xed   :  { %v328_v59 = vadd.f32 %v2212_v1, %v327_v58  ;;  %1720 = vmatprep.mubr.f32.mxu1 %v412_v55  ;;  %v415_v62 = vmax.f32 %v333_v57, 0.0 }
  0xee   :  { %v1648_v60 = vpop.f32.mrf.mxu0  ;;  %1721 = vmatmul.mubr.f32.gmra.mxu1 %v413_v56 }
  0xef   :  { %v414_v61 = vmax.f32 %v328_v59, 0.0  ;;  %v343_v63 = vadd.f32 %v1648_v60, %v2212_v1 }
  0xf0   :  { %v337_v0 = vpop.f32.mrf.mxu0 }
  0xf1   :  { %v338_v2 = vadd.f32 %v2212_v1, %v337_v0  ;;  %1723 = vmatprep.mubr.f32.mxu1 %v414_v61  ;;  %v417_v5 = vmax.f32 %v343_v63, 0.0 }
  0xf2   :  { %v1651_v3 = vpop.f32.mrf.mxu0  ;;  %1724 = vmatmul.mubr.f32.gmra.mxu1 %v415_v62 }
  0xf3   :  { %v416_v4 = vmax.f32 %v338_v2, 0.0  ;;  %v353_v6 = vadd.f32 %v1651_v3, %v2212_v1 }
  0xf4   :  { %v347_v7 = vpop.f32.mrf.mxu0 }
  0xf5   :  { %v348_v8 = vadd.f32 %v2212_v1, %v347_v7  ;;  %1726 = vmatprep.mubr.f32.mxu1 %v416_v4  ;;  %v419_v11 = vmax.f32 %v353_v6, 0.0 }
  0xf6   :  { %v1654_v9 = vpop.f32.mrf.mxu0  ;;  %1727 = vmatmul.mubr.f32.gmra.mxu1 %v417_v5 }
  0xf7   :  { %v418_v10 = vmax.f32 %v348_v8, 0.0  ;;  %v363_v12 = vadd.f32 %v1654_v9, %v2212_v1 }
  0xf8   :  { %v357_v13 = vpop.f32.mrf.mxu0 }
  0xf9   :  { %v358_v14 = vadd.f32 %v2212_v1, %v357_v13  ;;  %1729 = vmatprep.mubr.f32.mxu1 %v418_v10  ;;  %v421_v17 = vmax.f32 %v363_v12, 0.0 }
  0xfa   :  { %v1657_v15 = vpop.f32.mrf.mxu0  ;;  %1730 = vmatmul.mubr.f32.gmra.mxu1 %v419_v11 }
  0xfb   :  { %v420_v16 = vmax.f32 %v358_v14, 0.0  ;;  %v373_v18 = vadd.f32 %v1657_v15, %v2212_v1 }
  0xfc   :  { %v367_v19 = vpop.f32.mrf.mxu0 }
  0xfd   :  { %v368_v20 = vadd.f32 %v2212_v1, %v367_v19  ;;  %1732 = vmatprep.mubr.f32.mxu1 %v420_v16  ;;  %v423_v23 = vmax.f32 %v373_v18, 0.0 }
  0xfe   :  { %v1660_v21 = vpop.f32.mrf.mxu0  ;;  %1733 = vmatmul.mubr.f32.gmra.mxu1 %v421_v17 }
  0xff   :  { %v422_v22 = vmax.f32 %v368_v20, 0.0  ;;  %v383_v24 = vadd.f32 %v1660_v21, %v2212_v1 }
 0x100   :  { %v377_v25 = vpop.f32.mrf.mxu0 }
 0x101   :  { %v378_v26 = vadd.f32 %v2212_v1, %v377_v25  ;;  %1735 = vmatprep.mubr.f32.mxu1 %v422_v22  ;;  %v425_v29 = vmax.f32 %v383_v24, 0.0 }
 0x102   :  { %v1663_v27 = vpop.f32.mrf.mxu0  ;;  %1736 = vmatmul.mubr.f32.gmra.mxu1 %v423_v23 }
 0x103   :  { %v424_v28 = vmax.f32 %v378_v26, 0.0  ;;  %v393_v30 = vadd.f32 %v1663_v27, %v2212_v1 }
 0x104   :  { %v387_v31 = vpop.f32.mrf.mxu0 }
 0x105   :  { %v388_v32 = vadd.f32 %v2212_v1, %v387_v31  ;;  %1738 = vmatprep.mubr.f32.mxu1 %v424_v28  ;;  %v427_v34 = vmax.f32 %v393_v30, 0.0  ;;  %v994_v1 = vld [vmem:[%s2458_s7 + $0x30] sm:$0xff] }
 0x106   :  { %1739 = vmatmul.mubr.f32.gmra.mxu1 %v425_v29  ;;  %1889 = vmatprep.subr.mxu1 %v994_v1 }
 0x107   :  { %v426_v33 = vmax.f32 %v388_v32, 0.0  ;;  %1897 = vmatpush3.msra.mxu1 %v994_v1 }
 0x108   :  { %1890 = vmatprep.subr.mxu1 %v993_v37 }
 0x109   :  { %1741 = vmatprep.mubr.f32.mxu1 %v426_v33  ;;  %1898 = vmatpush3.msra.mxu1 %v993_v37 }
 0x10a   :  { %1742 = vmatmul.mubr.f32.gmra.mxu1 %v427_v34  ;;  %1891 = vmatprep.subr.mxu1 %v992_v38 }
 0x10b   :  { %1899 = vmatpush3.msra.mxu1 %v992_v38 }
 0x10c   :  { %1892 = vmatprep.subr.mxu1 %v991_v39 }
 0x10d   :  { %1900 = vmatpush3.msra.mxu1 %v991_v39 }
 0x10e   :  { %1893 = vmatprep.subr.mxu1 %v990_v40 }
 0x10f   :  { %1901 = vmatpush3.msra.mxu1 %v990_v40 }
 0x18e   :  { %v1698_v42 = vpop.f32.mrf.mxu1 }
 0x18f   :  { %v523_v43 = vadd.f32 %v1698_v42, %v2270_v41 }
 0x190   :  { %v517_v44 = vpop.f32.mrf.mxu1 }
 0x191   :  { %v518_v45 = vadd.f32 %v2270_v41, %v517_v44  ;;  %v677_v48 = vmax.f32 %v523_v43, 0.0 }
 0x192   :  { %v1701_v46 = vpop.f32.mrf.mxu1 }
 0x193   :  { %v676_v47 = vmax.f32 %v518_v45, 0.0  ;;  %v533_v49 = vadd.f32 %v1701_v46, %v2270_v41 }
 0x194   :  { %v527_v50 = vpop.f32.mrf.mxu1 }
 0x195   :  { %v528_v51 = vadd.f32 %v2270_v41, %v527_v50  ;;  %1776 = vmatprep.mubr.f32.mxu0 %v676_v47  ;;  %v679_v54 = vmax.f32 %v533_v49, 0.0 }
 0x196   :  { %v1704_v52 = vpop.f32.mrf.mxu1  ;;  %1777 = vmatmul.mubr.f32.vlgmr.msra.gmra.mxu0 %v677_v48 }
 0x197   :  { %v678_v53 = vmax.f32 %v528_v51, 0.0  ;;  %1825 = vmatpush3.msra.mxu0 %v995_v36  ;;  %v543_v55 = vadd.f32 %v1704_v52, %v2270_v41 }
 0x198   :  { %v537_v56 = vpop.f32.mrf.mxu1  ;;  %1826 = vmatprep.subr.mxu0 %v994_v1 }
 0x199   :  { %v538_v57 = vadd.f32 %v2270_v41, %v537_v56  ;;  %1779 = vmatprep.mubr.f32.mxu0 %v678_v53  ;;  %1827 = vmatpush3.msra.mxu0 %v994_v1  ;;  %v681_v60 = vmax.f32 %v543_v55, 0.0 }
 0x19a   :  { %v1707_v58 = vpop.f32.mrf.mxu1  ;;  %1780 = vmatmul.mubr.f32.gmra.mxu0 %v679_v54  ;;  %1828 = vmatprep.subr.mxu0 %v993_v37 }
 0x19b   :  { %v680_v59 = vmax.f32 %v538_v57, 0.0  ;;  %1829 = vmatpush3.msra.mxu0 %v993_v37  ;;  %v553_v61 = vadd.f32 %v1707_v58, %v2270_v41 }
 0x19c   :  { %v547_v62 = vpop.f32.mrf.mxu1  ;;  %1830 = vmatprep.subr.mxu0 %v992_v38 }
 0x19d   :  { %v548_v63 = vadd.f32 %v2270_v41, %v547_v62  ;;  %1782 = vmatprep.mubr.f32.mxu0 %v680_v59  ;;  %1831 = vmatpush3.msra.mxu0 %v992_v38  ;;  %v683_v3 = vmax.f32 %v553_v61, 0.0 }
 0x19e   :  { %v1710_v0 = vpop.f32.mrf.mxu1  ;;  %1783 = vmatmul.mubr.f32.gmra.mxu0 %v681_v60  ;;  %1832 = vmatprep.subr.mxu0 %v991_v39 }
 0x19f   :  { %v682_v2 = vmax.f32 %v548_v63, 0.0  ;;  %1833 = vmatpush3.msra.mxu0 %v991_v39  ;;  %v563_v4 = vadd.f32 %v1710_v0, %v2270_v41 }
 0x1a0   :  { %v557_v5 = vpop.f32.mrf.mxu1  ;;  %1834 = vmatprep.subr.mxu0 %v990_v40 }
 0x1a1   :  { %v558_v6 = vadd.f32 %v2270_v41, %v557_v5  ;;  %1785 = vmatprep.mubr.f32.mxu0 %v682_v2  ;;  %1835 = vmatpush3.msra.mxu0 %v990_v40  ;;  %v685_v9 = vmax.f32 %v563_v4, 0.0 }
 0x1a2   :  { %v1713_v7 = vpop.f32.mrf.mxu1  ;;  %1786 = vmatmul.mubr.f32.gmra.mxu0 %v683_v3 }
 0x1a3   :  { %v684_v8 = vmax.f32 %v558_v6, 0.0  ;;  %v573_v10 = vadd.f32 %v1713_v7, %v2270_v41 }
 0x1a4   :  { %v567_v11 = vpop.f32.mrf.mxu1 }
 0x1a5   :  { %v568_v12 = vadd.f32 %v2270_v41, %v567_v11  ;;  %1788 = vmatprep.mubr.f32.mxu0 %v684_v8  ;;  %v687_v15 = vmax.f32 %v573_v10, 0.0 }
 0x1a6   :  { %v1716_v13 = vpop.f32.mrf.mxu1  ;;  %1789 = vmatmul.mubr.f32.gmra.mxu0 %v685_v9 }
 0x1a7   :  { %v686_v14 = vmax.f32 %v568_v12, 0.0  ;;  %v583_v16 = vadd.f32 %v1716_v13, %v2270_v41  ;;  %v989_v12 = vld [vmem:[%s2458_s7 + $0x8] sm:$0xff]  ;;  %v988_v13 = vld [vmem:[%s2458_s7] sm:$0xff] }
 0x1a8   :  { %v577_v17 = vpop.f32.mrf.mxu1  ;;  %1894 = vmatprep.subr.mxu1 %v989_v12  ;;  %1836 = vmatprep.subr.mxu0 %v989_v12 }
 0x1a9   :  { %v578_v18 = vadd.f32 %v2270_v41, %v577_v17  ;;  %1791 = vmatprep.mubr.f32.mxu0 %v686_v14  ;;  %v689_v21 = vmax.f32 %v583_v16, 0.0  ;;  %1902 = vmatpush3.msra.mxu1 %v989_v12 }
 0x1aa   :  { %v1719_v19 = vpop.f32.mrf.mxu1  ;;  %1792 = vmatmul.mubr.f32.gmra.mxu0 %v687_v15  ;;  %1895 = vmatprep.subr.mxu1 %v988_v13 }
 0x1ab   :  { %v688_v20 = vmax.f32 %v578_v18, 0.0  ;;  %v593_v22 = vadd.f32 %v1719_v19, %v2270_v41  ;;  %1837 = vmatpush3.msra.mxu0 %v989_v12  ;;  %1903 = vmatpush3.msra.mxu1 %v988_v13 }
 0x1ac   :  { %v587_v23 = vpop.f32.mrf.mxu1  ;;  %1838 = vmatprep.subr.mxu0 %v988_v13 }
 0x1ad   :  { %v588_v24 = vadd.f32 %v2270_v41, %v587_v23  ;;  %1794 = vmatprep.mubr.f32.mxu0 %v688_v20  ;;  %v691_v27 = vmax.f32 %v593_v22, 0.0  ;;  %1839 = vmatpush3.msra.mxu0 %v988_v13 }
 0x1ae   :  { %v1722_v25 = vpop.f32.mrf.mxu1  ;;  %1795 = vmatmul.mubr.f32.gmra.mxu0 %v689_v21 }
 0x1af   :  { %v690_v26 = vmax.f32 %v588_v24, 0.0  ;;  %v603_v28 = vadd.f32 %v1722_v25, %v2270_v41 }
 0x1b0   :  { %v597_v29 = vpop.f32.mrf.mxu1 }
 0x1b1   :  { %v598_v30 = vadd.f32 %v2270_v41, %v597_v29  ;;  %1797 = vmatprep.mubr.f32.mxu0 %v690_v26  ;;  %v693_v33 = vmax.f32 %v603_v28, 0.0 }
 0x1b2   :  { %v1725_v31 = vpop.f32.mrf.mxu1  ;;  %1798 = vmatmul.mubr.f32.gmra.mxu0 %v691_v27 }
 0x1b3   :  { %v692_v32 = vmax.f32 %v598_v30, 0.0  ;;  %v613_v34 = vadd.f32 %v1725_v31, %v2270_v41 }
 0x1b4   :  { %v607_v35 = vpop.f32.mrf.mxu1 }
 0x1b5   :  { %v608_v36 = vadd.f32 %v2270_v41, %v607_v35  ;;  %1800 = vmatprep.mubr.f32.mxu0 %v692_v32  ;;  %v695_v38 = vmax.f32 %v613_v34, 0.0 }
 0x1b6   :  { %v1728_v1 = vpop.f32.mrf.mxu1  ;;  %1801 = vmatmul.mubr.f32.gmra.mxu0 %v693_v33 }
 0x1b7   :  { %v694_v37 = vmax.f32 %v608_v36, 0.0  ;;  %v623_v39 = vadd.f32 %v1728_v1, %v2270_v41 }
 0x1b8   :  { %v617_v40 = vpop.f32.mrf.mxu1 }
 0x1b9   :  { %v618_v42 = vadd.f32 %v2270_v41, %v617_v40  ;;  %1803 = vmatprep.mubr.f32.mxu0 %v694_v37  ;;  %v697_v45 = vmax.f32 %v623_v39, 0.0 }
 0x1ba   :  { %v1731_v43 = vpop.f32.mrf.mxu1  ;;  %1804 = vmatmul.mubr.f32.gmra.mxu0 %v695_v38 }
 0x1bb   :  { %v696_v44 = vmax.f32 %v618_v42, 0.0  ;;  %v633_v46 = vadd.f32 %v1731_v43, %v2270_v41 }
 0x1bc   :  { %v627_v47 = vpop.f32.mrf.mxu1 }
 0x1bd   :  { %v628_v48 = vadd.f32 %v2270_v41, %v627_v47  ;;  %1806 = vmatprep.mubr.f32.mxu0 %v696_v44  ;;  %v699_v51 = vmax.f32 %v633_v46, 0.0 }
 0x1be   :  { %v1734_v49 = vpop.f32.mrf.mxu1  ;;  %1807 = vmatmul.mubr.f32.gmra.mxu0 %v697_v45 }
 0x1bf   :  { %v698_v50 = vmax.f32 %v628_v48, 0.0  ;;  %v643_v52 = vadd.f32 %v1734_v49, %v2270_v41 }
 0x1c0   :  { %v637_v53 = vpop.f32.mrf.mxu1 }
 0x1c1   :  { %v638_v54 = vadd.f32 %v2270_v41, %v637_v53  ;;  %1809 = vmatprep.mubr.f32.mxu0 %v698_v50  ;;  %v701_v57 = vmax.f32 %v643_v52, 0.0 }
 0x1c2   :  { %v1737_v55 = vpop.f32.mrf.mxu1  ;;  %1810 = vmatmul.mubr.f32.gmra.mxu0 %v699_v51 }
 0x1c3   :  { %v700_v56 = vmax.f32 %v638_v54, 0.0  ;;  %v653_v58 = vadd.f32 %v1737_v55, %v2270_v41 }
 0x1c4   :  { %v647_v59 = vpop.f32.mrf.mxu1 }
 0x1c5   :  { %v648_v60 = vadd.f32 %v2270_v41, %v647_v59  ;;  %1812 = vmatprep.mubr.f32.mxu0 %v700_v56  ;;  %v703_v63 = vmax.f32 %v653_v58, 0.0 }
 0x1c6   :  { %v1740_v61 = vpop.f32.mrf.mxu1  ;;  %1813 = vmatmul.mubr.f32.gmra.mxu0 %v701_v57 }
 0x1c7   :  { %v702_v62 = vmax.f32 %v648_v60, 0.0  ;;  %v663_v0 = vadd.f32 %v1740_v61, %v2270_v41 }
 0x1c8   :  { %v657_v2 = vpop.f32.mrf.mxu1 }
 0x1c9   :  { %v658_v3 = vadd.f32 %v2270_v41, %v657_v2  ;;  %1815 = vmatprep.mubr.f32.mxu0 %v702_v62  ;;  %v705_v6 = vmax.f32 %v663_v0, 0.0 }
 0x1ca   :  { %v1743_v4 = vpop.f32.mrf.mxu1  ;;  %1816 = vmatmul.mubr.f32.gmra.mxu0 %v703_v63 }
 0x1cb   :  { %v704_v5 = vmax.f32 %v658_v3, 0.0  ;;  %v673_v7 = vadd.f32 %v1743_v4, %v2270_v41 }
 0x1cc   :  { %v667_v8 = vpop.f32.mrf.mxu1 }
 0x1cd   :  { %v668_v9 = vadd.f32 %v2270_v41, %v667_v8  ;;  %1818 = vmatprep.mubr.f32.mxu0 %v704_v5  ;;  %v707_v11 = vmax.f32 %v673_v7, 0.0  ;;  %v2313_v41 = vld [vmem:[%s2457_s6] ss:$0 sm:$0xff] }
 0x1ce   :  { %1819 = vmatmul.mubr.f32.gmra.mxu0 %v705_v6 }
 0x1cf   :  { %v706_v10 = vmax.f32 %v668_v9, 0.0 }
 0x1d1   :  { %1821 = vmatprep.mubr.f32.mxu0 %v706_v10 }
 0x1d2   :  { %1822 = vmatmul.mubr.f32.gmra.mxu0 %v707_v11 }
 0x256   :  { %v1778_v14 = vpop.f32.mrf.mxu0 }
 0x257   :  { %v803_v15 = vadd.f32 %v1778_v14, %v2313_v41 }
 0x258   :  { %v797_v16 = vpop.f32.mrf.mxu0 }
 0x259   :  { %v798_v17 = vadd.f32 %v2313_v41, %v797_v16  ;;  %v957_v20 = vmax.f32 %v803_v15, 0.0 }
 0x25a   :  { %v1781_v18 = vpop.f32.mrf.mxu0 }
 0x25b   :  { %v956_v19 = vmax.f32 %v798_v17, 0.0  ;;  %v813_v21 = vadd.f32 %v1781_v18, %v2313_v41 }
 0x25c   :  { %v807_v22 = vpop.f32.mrf.mxu0 }
 0x25d   :  { %v808_v23 = vadd.f32 %v2313_v41, %v807_v22  ;;  %1840 = vmatprep.mubr.msk.f32.mxu0 %vm1003_vm1, %v956_v19  ;;  %v959_v26 = vmax.f32 %v813_v21, 0.0 }
 0x25e   :  { %v1784_v24 = vpop.f32.mrf.mxu0  ;;  %1841 = vmatmul.mubr.msk.f32.vlgmr.msra.gmra.mxu0 %vm1003_vm1, %v957_v20 }
 0x25f   :  { %v958_v25 = vmax.f32 %v808_v23, 0.0  ;;  %v823_v27 = vadd.f32 %v1784_v24, %v2313_v41 }
 0x260   :  { %v817_v28 = vpop.f32.mrf.mxu0 }
 0x261   :  { %v818_v29 = vadd.f32 %v2313_v41, %v817_v28  ;;  %1843 = vmatprep.mubr.msk.f32.mxu0 %vm1003_vm1, %v958_v25  ;;  %v961_v32 = vmax.f32 %v823_v27, 0.0 }
 0x262   :  { %v1787_v30 = vpop.f32.mrf.mxu0  ;;  %1844 = vmatmul.mubr.msk.f32.gmra.mxu0 %vm1003_vm1, %v959_v26 }
 0x263   :  { %v960_v31 = vmax.f32 %v818_v29, 0.0  ;;  %v833_v33 = vadd.f32 %v1787_v30, %v2313_v41 }
 0x264   :  { %v827_v34 = vpop.f32.mrf.mxu0 }
 0x265   :  { %v828_v35 = vadd.f32 %v2313_v41, %v827_v34  ;;  %1846 = vmatprep.mubr.msk.f32.mxu0 %vm1003_vm1, %v960_v31  ;;  %v963_v37 = vmax.f32 %v833_v33, 0.0 }
 0x266   :  { %v1790_v36 = vpop.f32.mrf.mxu0  ;;  %1847 = vmatmul.mubr.msk.f32.gmra.mxu0 %vm1003_vm1, %v961_v32 }
 0x267   :  { %v962_v1 = vmax.f32 %v828_v35, 0.0  ;;  %v843_v38 = vadd.f32 %v1790_v36, %v2313_v41 }
 0x268   :  { %v837_v39 = vpop.f32.mrf.mxu0 }
 0x269   :  { %v838_v40 = vadd.f32 %v2313_v41, %v837_v39  ;;  %1849 = vmatprep.mubr.msk.f32.mxu1 %vm1003_vm1, %v962_v1  ;;  %v965_v44 = vmax.f32 %v843_v38, 0.0 }
 0x26a   :  { %v1793_v42 = vpop.f32.mrf.mxu0  ;;  %1850 = vmatmul.mubr.msk.f32.vlgmr.msra.gmra.mxu1 %vm1003_vm1, %v963_v37 }
 0x26b   :  { %v964_v43 = vmax.f32 %v838_v40, 0.0  ;;  %v853_v45 = vadd.f32 %v1793_v42, %v2313_v41 }
 0x26c   :  { %v847_v46 = vpop.f32.mrf.mxu0 }
 0x26d   :  { %v848_v47 = vadd.f32 %v2313_v41, %v847_v46  ;;  %1852 = vmatprep.mubr.msk.f32.mxu1 %vm1003_vm1, %v964_v43  ;;  %v967_v50 = vmax.f32 %v853_v45, 0.0 }
 0x26e   :  { %v1796_v48 = vpop.f32.mrf.mxu0  ;;  %1853 = vmatmul.mubr.msk.f32.gmra.mxu1 %vm1003_vm1, %v965_v44 }
 0x26f   :  { %v966_v49 = vmax.f32 %v848_v47, 0.0  ;;  %v863_v51 = vadd.f32 %v1796_v48, %v2313_v41  ;;  %v2382_v47 = vld [vmem:[%s2459_s8] ss:$0 sm:$0xff] }
 0x270   :  { %v857_v52 = vpop.f32.mrf.mxu0 }
 0x271   :  { %v858_v53 = vadd.f32 %v2313_v41, %v857_v52  ;;  %1855 = vmatprep.mubr.msk.f32.mxu1 %vm1003_vm1, %v966_v49  ;;  %v969_v56 = vmax.f32 %v863_v51, 0.0 }
 0x272   :  { %v1799_v54 = vpop.f32.mrf.mxu0  ;;  %1856 = vmatmul.mubr.msk.f32.gmra.mxu1 %vm1003_vm1, %v967_v50 }
 0x273   :  { %v968_v55 = vmax.f32 %v858_v53, 0.0  ;;  %v873_v57 = vadd.f32 %v1799_v54, %v2313_v41 }
 0x274   :  { %v867_v58 = vpop.f32.mrf.mxu0 }
 0x275   :  { %v868_v59 = vadd.f32 %v2313_v41, %v867_v58  ;;  %1858 = vmatprep.mubr.msk.f32.mxu1 %vm1003_vm1, %v968_v55  ;;  %v971_v62 = vmax.f32 %v873_v57, 0.0 }
 0x276   :  { %v1802_v60 = vpop.f32.mrf.mxu0  ;;  %1859 = vmatmul.mubr.msk.f32.gmra.mxu1 %vm1003_vm1, %v969_v56 }
 0x277   :  { %v970_v61 = vmax.f32 %v868_v59, 0.0  ;;  %v883_v63 = vadd.f32 %v1802_v60, %v2313_v41 }
 0x278   :  { %v877_v0 = vpop.f32.mrf.mxu0 }
 0x279   :  { %v878_v2 = vadd.f32 %v2313_v41, %v877_v0  ;;  %1861 = vmatprep.mubr.msk.f32.mxu1 %vm1003_vm1, %v970_v61  ;;  %v973_v5 = vmax.f32 %v883_v63, 0.0 }
 0x27a   :  { %v1805_v3 = vpop.f32.mrf.mxu0  ;;  %1862 = vmatmul.mubr.msk.f32.gmra.mxu1 %vm1003_vm1, %v971_v62 }
 0x27b   :  { %v972_v4 = vmax.f32 %v878_v2, 0.0  ;;  %v893_v6 = vadd.f32 %v1805_v3, %v2313_v41 }
 0x27c   :  { %v887_v7 = vpop.f32.mrf.mxu0 }
 0x27d   :  { %v888_v8 = vadd.f32 %v2313_v41, %v887_v7  ;;  %1864 = vmatprep.mubr.msk.f32.mxu1 %vm1003_vm1, %v972_v4  ;;  %v975_v11 = vmax.f32 %v893_v6, 0.0 }
 0x27e   :  { %v1808_v9 = vpop.f32.mrf.mxu0  ;;  %1865 = vmatmul.mubr.msk.f32.gmra.mxu1 %vm1003_vm1, %v973_v5 }
 0x27f   :  { %v974_v10 = vmax.f32 %v888_v8, 0.0  ;;  %v903_v12 = vadd.f32 %v1808_v9, %v2313_v41 }
 0x280   :  { %v897_v13 = vpop.f32.mrf.mxu0 }
 0x281   :  { %v898_v14 = vadd.f32 %v2313_v41, %v897_v13  ;;  %1867 = vmatprep.mubr.msk.f32.mxu1 %vm1003_vm1, %v974_v10  ;;  %v977_v17 = vmax.f32 %v903_v12, 0.0 }
 0x282   :  { %v1811_v15 = vpop.f32.mrf.mxu0  ;;  %1868 = vmatmul.mubr.msk.f32.gmra.mxu1 %vm1003_vm1, %v975_v11 }
 0x283   :  { %v976_v16 = vmax.f32 %v898_v14, 0.0  ;;  %v913_v18 = vadd.f32 %v1811_v15, %v2313_v41 }
 0x284   :  { %v907_v19 = vpop.f32.mrf.mxu0 }
 0x285   :  { %v908_v20 = vadd.f32 %v2313_v41, %v907_v19  ;;  %1870 = vmatprep.mubr.msk.f32.mxu1 %vm1003_vm1, %v976_v16  ;;  %v979_v23 = vmax.f32 %v913_v18, 0.0 }
 0x286   :  { %v1814_v21 = vpop.f32.mrf.mxu0  ;;  %1871 = vmatmul.mubr.msk.f32.gmra.mxu1 %vm1003_vm1, %v977_v17 }
 0x287   :  { %v978_v22 = vmax.f32 %v908_v20, 0.0  ;;  %v923_v24 = vadd.f32 %v1814_v21, %v2313_v41 }
 0x288   :  { %v917_v25 = vpop.f32.mrf.mxu0 }
 0x289   :  { %v918_v26 = vadd.f32 %v2313_v41, %v917_v25  ;;  %1873 = vmatprep.mubr.msk.f32.mxu1 %vm1003_vm1, %v978_v22  ;;  %v981_v29 = vmax.f32 %v923_v24, 0.0 }
 0x28a   :  { %v1817_v27 = vpop.f32.mrf.mxu0  ;;  %1874 = vmatmul.mubr.msk.f32.gmra.mxu1 %vm1003_vm1, %v979_v23 }
 0x28b   :  { %v980_v28 = vmax.f32 %v918_v26, 0.0  ;;  %v933_v30 = vadd.f32 %v1817_v27, %v2313_v41 }
 0x28c   :  { %v927_v31 = vpop.f32.mrf.mxu0 }
 0x28d   :  { %v928_v32 = vadd.f32 %v2313_v41, %v927_v31  ;;  %1876 = vmatprep.mubr.msk.f32.mxu1 %vm1003_vm1, %v980_v28  ;;  %v983_v35 = vmax.f32 %v933_v30, 0.0 }
 0x28e   :  { %v1820_v33 = vpop.f32.mrf.mxu0  ;;  %1877 = vmatmul.mubr.msk.f32.gmra.mxu1 %vm1003_vm1, %v981_v29 }
 0x28f   :  { %v982_v34 = vmax.f32 %v928_v32, 0.0  ;;  %v943_v36 = vadd.f32 %v1820_v33, %v2313_v41 }
 0x290   :  { %v937_v1 = vpop.f32.mrf.mxu0 }
 0x291   :  { %v938_v37 = vadd.f32 %v2313_v41, %v937_v1  ;;  %1879 = vmatprep.mubr.msk.f32.mxu1 %vm1003_vm1, %v982_v34  ;;  %v985_v40 = vmax.f32 %v943_v36, 0.0 }
 0x292   :  { %v1823_v38 = vpop.f32.mrf.mxu0  ;;  %1880 = vmatmul.mubr.msk.f32.gmra.mxu1 %vm1003_vm1, %v983_v35 }
 0x293   :  { %v984_v39 = vmax.f32 %v938_v37, 0.0  ;;  %v953_v42 = vadd.f32 %v1823_v38, %v2313_v41 }
 0x294   :  { %v947_v43 = vpop.f32.mrf.mxu0 }
 0x295   :  { %v948_v44 = vadd.f32 %v2313_v41, %v947_v43  ;;  %1882 = vmatprep.mubr.msk.f32.mxu1 %vm1003_vm1, %v984_v39  ;;  %v987_v46 = vmax.f32 %v953_v42, 0.0 }
 0x296   :  { %1883 = vmatmul.mubr.msk.f32.gmra.mxu1 %vm1003_vm1, %v985_v40 }
 0x297   :  { %v986_v45 = vmax.f32 %v948_v44, 0.0 }
 0x299   :  { %1885 = vmatprep.mubr.msk.f32.mxu1 %vm1003_vm1, %v986_v45 }
 0x29a   :  { %1886 = vmatmul.mubr.msk.f32.gmra.mxu1 %vm1003_vm1, %v987_v46 }
 0x31e   :  { %v1842_v48 = vpop.f32.mrf.mxu0 }
 0x31f   :  { %v1172_v49 = vadd.f32 %v1842_v48, %v2382_v47 }
 0x320   :  { %v1166_v41 = vpop.f32.mrf.mxu0 }
 0x321   :  { %1327 = vst.msk [vmem:[#allocation2 + $0x8] sm:$0xff] %vm1325_vm2, %v1172_v49  ;;  %v1167_v50 = vadd.f32 %v2382_v47, %v1166_v41 }
 0x322   :  { %v1845_v51 = vpop.f32.mrf.mxu0 }
 0x323   :  { %1326 = vst.msk [vmem:[#allocation2] sm:$0xff] %vm1325_vm2, %v1167_v50  ;;  %v1182_v52 = vadd.f32 %v1845_v51, %v2382_v47 }
 0x324   :  { %v1176_v53 = vpop.f32.mrf.mxu0 }
 0x325   :  { %1329 = vst.msk [vmem:[#allocation2 + $0x18] sm:$0xff] %vm1325_vm2, %v1182_v52  ;;  %v1177_v54 = vadd.f32 %v2382_v47, %v1176_v53 }
 0x326   :  { %v1848_v55 = vpop.f32.mrf.mxu0 }
 0x327   :  { %1328 = vst.msk [vmem:[#allocation2 + $0x10] sm:$0xff] %vm1325_vm2, %v1177_v54  ;;  %v1192_v56 = vadd.f32 %v1848_v55, %v2382_v47 }
 0x328   :  { %v1186_v57 = vpop.f32.mrf.mxu0 }
 0x329   :  { %1331 = vst.msk [vmem:[#allocation2 + $0x28] sm:$0xff] %vm1325_vm2, %v1192_v56  ;;  %v1187_v58 = vadd.f32 %v2382_v47, %v1186_v57 }
 0x32a   :  { %v1851_v59 = vpop.f32.mrf.mxu1 }
 0x32b   :  { %1330 = vst.msk [vmem:[#allocation2 + $0x20] sm:$0xff] %vm1325_vm2, %v1187_v58  ;;  %v1202_v60 = vadd.f32 %v1851_v59, %v2382_v47 }
 0x32c   :  { %v1196_v61 = vpop.f32.mrf.mxu1 }
 0x32d   :  { %1333 = vst.msk [vmem:[#allocation2 + $0x38] sm:$0xff] %vm1325_vm2, %v1202_v60  ;;  %v1197_v62 = vadd.f32 %v2382_v47, %v1196_v61 }
 0x32e   :  { %v1854_v63 = vpop.f32.mrf.mxu1 }
 0x32f   :  { %1332 = vst.msk [vmem:[#allocation2 + $0x30] sm:$0xff] %vm1325_vm2, %v1197_v62  ;;  %v1212_v0 = vadd.f32 %v1854_v63, %v2382_v47 }
 0x330   :  { %v1206_v2 = vpop.f32.mrf.mxu1 }
 0x331   :  { %1335 = vst.msk [vmem:[#allocation2 + $0x48] sm:$0xff] %vm1325_vm2, %v1212_v0  ;;  %v1207_v3 = vadd.f32 %v2382_v47, %v1206_v2 }
 0x332   :  { %v1857_v4 = vpop.f32.mrf.mxu1 }
 0x333   :  { %1334 = vst.msk [vmem:[#allocation2 + $0x40] sm:$0xff] %vm1325_vm2, %v1207_v3  ;;  %v1222_v5 = vadd.f32 %v1857_v4, %v2382_v47 }
 0x334   :  { %v1216_v6 = vpop.f32.mrf.mxu1 }
 0x335   :  { %1337 = vst.msk [vmem:[#allocation2 + $0x58] sm:$0xff] %vm1325_vm2, %v1222_v5  ;;  %v1217_v7 = vadd.f32 %v2382_v47, %v1216_v6 }
 0x336   :  { %v1860_v8 = vpop.f32.mrf.mxu1 }
 0x337   :  { %1336 = vst.msk [vmem:[#allocation2 + $0x50] sm:$0xff] %vm1325_vm2, %v1217_v7  ;;  %v1232_v9 = vadd.f32 %v1860_v8, %v2382_v47 }
 0x338   :  { %v1226_v10 = vpop.f32.mrf.mxu1 }
 0x339   :  { %1339 = vst.msk [vmem:[#allocation2 + $0x68] sm:$0xff] %vm1325_vm2, %v1232_v9  ;;  %v1227_v11 = vadd.f32 %v2382_v47, %v1226_v10 }
 0x33a   :  { %v1863_v12 = vpop.f32.mrf.mxu1 }
 0x33b   :  { %1338 = vst.msk [vmem:[#allocation2 + $0x60] sm:$0xff] %vm1325_vm2, %v1227_v11  ;;  %v1242_v13 = vadd.f32 %v1863_v12, %v2382_v47 }
 0x33c   :  { %v1236_v14 = vpop.f32.mrf.mxu1 }
 0x33d   :  { %1341 = vst.msk [vmem:[#allocation2 + $0x78] sm:$0xff] %vm1325_vm2, %v1242_v13  ;;  %v1237_v15 = vadd.f32 %v2382_v47, %v1236_v14 }
 0x33e   :  { %v1866_v16 = vpop.f32.mrf.mxu1 }
 0x33f   :  { %1340 = vst.msk [vmem:[#allocation2 + $0x70] sm:$0xff] %vm1325_vm2, %v1237_v15  ;;  %v1252_v17 = vadd.f32 %v1866_v16, %v2382_v47 }
 0x340   :  { %v1246_v18 = vpop.f32.mrf.mxu1 }
 0x341   :  { %1343 = vst.msk [vmem:[#allocation2 + $0x88] sm:$0xff] %vm1325_vm2, %v1252_v17  ;;  %v1247_v19 = vadd.f32 %v2382_v47, %v1246_v18 }
 0x342   :  { %v1869_v20 = vpop.f32.mrf.mxu1 }
 0x343   :  { %1342 = vst.msk [vmem:[#allocation2 + $0x80] sm:$0xff] %vm1325_vm2, %v1247_v19  ;;  %v1262_v21 = vadd.f32 %v1869_v20, %v2382_v47 }
 0x344   :  { %v1256_v22 = vpop.f32.mrf.mxu1 }
 0x345   :  { %1345 = vst.msk [vmem:[#allocation2 + $0x98] sm:$0xff] %vm1325_vm2, %v1262_v21  ;;  %v1257_v23 = vadd.f32 %v2382_v47, %v1256_v22 }
 0x346   :  { %v1872_v24 = vpop.f32.mrf.mxu1 }
 0x347   :  { %1344 = vst.msk [vmem:[#allocation2 + $0x90] sm:$0xff] %vm1325_vm2, %v1257_v23  ;;  %v1272_v25 = vadd.f32 %v1872_v24, %v2382_v47 }
 0x348   :  { %v1266_v26 = vpop.f32.mrf.mxu1 }
 0x349   :  { %1347 = vst.msk [vmem:[#allocation2 + $0xa8] sm:$0xff] %vm1325_vm2, %v1272_v25  ;;  %v1267_v27 = vadd.f32 %v2382_v47, %v1266_v26 }
 0x34a   :  { %v1875_v28 = vpop.f32.mrf.mxu1 }
 0x34b   :  { %1346 = vst.msk [vmem:[#allocation2 + $0xa0] sm:$0xff] %vm1325_vm2, %v1267_v27  ;;  %v1282_v29 = vadd.f32 %v1875_v28, %v2382_v47 }
 0x34c   :  { %v1276_v30 = vpop.f32.mrf.mxu1 }
 0x34d   :  { %1349 = vst.msk [vmem:[#allocation2 + $0xb8] sm:$0xff] %vm1325_vm2, %v1282_v29  ;;  %v1277_v31 = vadd.f32 %v2382_v47, %v1276_v30 }
 0x34e   :  { %v1878_v32 = vpop.f32.mrf.mxu1 }
 0x34f   :  { %1348 = vst.msk [vmem:[#allocation2 + $0xb0] sm:$0xff] %vm1325_vm2, %v1277_v31  ;;  %v1292_v33 = vadd.f32 %v1878_v32, %v2382_v47 }
 0x350   :  { %v1286_v34 = vpop.f32.mrf.mxu1 }
 0x351   :  { %1351 = vst.msk [vmem:[#allocation2 + $0xc8] sm:$0xff] %vm1325_vm2, %v1292_v33  ;;  %v1287_v35 = vadd.f32 %v2382_v47, %v1286_v34 }
 0x352   :  { %v1881_v36 = vpop.f32.mrf.mxu1 }
 0x353   :  { %1350 = vst.msk [vmem:[#allocation2 + $0xc0] sm:$0xff] %vm1325_vm2, %v1287_v35  ;;  %v1302_v1 = vadd.f32 %v1881_v36, %v2382_v47 }
 0x354   :  { %v1296_v37 = vpop.f32.mrf.mxu1 }
 0x355   :  { %1353 = vst.msk [vmem:[#allocation2 + $0xd8] sm:$0xff] %vm1325_vm2, %v1302_v1  ;;  %v1297_v38 = vadd.f32 %v2382_v47, %v1296_v37 }
 0x356   :  { %v1884_v39 = vpop.f32.mrf.mxu1 }
 0x357   :  { %1352 = vst.msk [vmem:[#allocation2 + $0xd0] sm:$0xff] %vm1325_vm2, %v1297_v38  ;;  %v1312_v40 = vadd.f32 %v1884_v39, %v2382_v47 }
 0x358   :  { %v1306_v42 = vpop.f32.mrf.mxu1 }
 0x359   :  { %1355 = vst.msk [vmem:[#allocation2 + $0xe8] sm:$0xff] %vm1325_vm2, %v1312_v40  ;;  %v1307_v43 = vadd.f32 %v2382_v47, %v1306_v42 }
 0x35a   :  { %v1887_v44 = vpop.f32.mrf.mxu1 }
 0x35b   :  { %1354 = vst.msk [vmem:[#allocation2 + $0xe0] sm:$0xff] %vm1325_vm2, %v1307_v43  ;;  %v1322_v45 = vadd.f32 %v1887_v44, %v2382_v47 }
 0x35c   :  { %v1316_v46 = vpop.f32.mrf.mxu1 }
 0x35d   :  { %1357 = vst.msk [vmem:[#allocation2 + $0xf8] sm:$0xff] %vm1325_vm2, %v1322_v45  ;;  %v1317_v48 = vadd.f32 %v2382_v47, %v1316_v46 }
 0x35f   :  { %1356 = vst.msk [vmem:[#allocation2 + $0xf0] sm:$0xff] %vm1325_vm2, %v1317_v48 }
 0x360   :  { %1362 = vsyncadd [#allocation3], 4064  ;;  %s1929_s8 = smov [#allocation2]  }
 0x361   :  { %s1363_s22 = sshll.u32 %s1929_s8, 4  ;;  %s1364_s22 = int_to_ptr.vmem [resolvable:$true] %s1363_s22 }
 0x362   :  { %s1907_s23 = scalar_lea.vmem %s1364_s22, 32  ;;  %s1911_s24 = scalar_lea.vmem %s1364_s22, 4096 }
 0x363   :  { %p1908_p0 = scmp.ne.s32.totalorder %s1364_s22, %s1907_s23  ;;  %p1912_p1 = scmp.lt.s32.totalorder %s1364_s22, %s1364_s22 }
 0x364   :  { %p1913_p2 = scmp.lt.s32.totalorder %s1911_s24, %s1907_s23 }
 0x366   :  { %p1914_p3 = por %p1913_p2, %p1912_p1 }
 0x368   :  { %p1915_p4 = pnand %p1914_p3, %p1908_p0 }
 0x36a   :  { %1918 = shalt.err (!%p1915_p4)
}
 0x36b   :  { %s1930_s25 = smov 32   ;;  %s1931_s3 = smov 2  }
 0x36c   :  { %1369 = dma.vmem_to_hbm [thread:$0]  %s1364_s22, 32, %s2460_s9, [#allocation3], %s1930_s25, %s1930_s25, %s1931_s3  }
 0x36d   :  { %1927 = dma.done.wait [#allocation3], 4096  }
 0x36e   :  { %1928 = vsyncadd [#allocation3], 4294963200 }
 0x36f   :  { %1373 = vsyncpa [#allocation3], 1 }

</bundles_post_ra>
